<compile_context>
chip_gen: v5e
topology: v5e:2x2
jax: 0.10.0
libtpu: 0.0.40
codegen_flags: <defaults>
</compile_context>

<pallas_src>
import jax
import jax.numpy as jnp
from jax.experimental import pallas as pl
from jax.experimental.pallas import tpu as pltpu


def _round_up(x, m):
    return ((x + m - 1) // m) * m


# --------------------- pass 1: tiled global min / max ----------------------

def _minmax_kernel(src_ref, tgt_ref, mn_ref, mx_ref):
    i = pl.program_id(0)
    blk_min = jnp.minimum(jnp.min(src_ref[...]), jnp.min(tgt_ref[...]))
    blk_max = jnp.maximum(jnp.max(src_ref[...]), jnp.max(tgt_ref[...]))

    @pl.when(i == 0)
    def _():
        mn_ref[0, 0] = blk_min
        mx_ref[0, 0] = blk_max

    @pl.when(i != 0)
    def _():
        mn_ref[0, 0] = jnp.minimum(mn_ref[0, 0], blk_min)
        mx_ref[0, 0] = jnp.maximum(mx_ref[0, 0], blk_max)


# ----------------- pass 2: tiled normalize + uint8 quantize ----------------

def _normalize_kernel(scal_ref, src_ref, tgt_ref, out_ref):
    mn = scal_ref[0]            # global min
    scale = scal_ref[1]         # 255 / (max - min), computed once outside
    out_ref[0] = ((src_ref[...] - mn) * scale).astype(jnp.uint8)
    out_ref[1] = ((tgt_ref[...] - mn) * scale).astype(jnp.uint8)


# -------------------------------- wrapper -----------------------------------

def trakem_preprocess(src_img, tgt_img, *, lane=512, block_rows=256):
    """Pallas equivalent of steps 1-3 of Model.forward.

    src_img / tgt_img: (1, 1, H, W) float arrays (NCHW, like the PyTorch module).
    Returns: (2, H, W) uint8 stack (what the module hands to TrakEM2.align).
    """
    src = jnp.squeeze(src_img).astype(jnp.float32)
    tgt = jnp.squeeze(tgt_img).astype(jnp.float32)
    assert src.shape == tgt.shape and src.ndim == 2
    H, W = src.shape
    n = H * W

    # Lane/sublane-dense view: (rows, lane) with lane % 128 == 0 and, on the
    # tiled path, block_rows a multiple of 32 (unmasked uint8 stores).
    rows_raw = pl.cdiv(n, lane)
    rows_8 = _round_up(rows_raw, 8)
    if rows_8 <= block_rows:
        block_rows = rows_8          # small image: single full-size block
    rows = _round_up(rows_raw, block_rows)
    padded = rows * lane
    grid = (rows // block_rows,)

    def to_2d(x):
        flat = x.reshape(-1)
        if padded != n:
            # Pad with the first element so the global min/max is unchanged.
            flat = jnp.concatenate(
                [flat, jnp.full((padded - n,), flat[0], dtype=flat.dtype)])
        return flat.reshape(rows, lane)

    src2d = to_2d(src)
    tgt2d = to_2d(tgt)

    img_spec = pl.BlockSpec((block_rows, lane), lambda i: (i, 0))

    # ---- pass 1: global min / max (accumulated in SMEM scalar outputs) ----
    mn, mx = pl.pallas_call(
        _minmax_kernel,
        out_shape=(jax.ShapeDtypeStruct((1, 1), jnp.float32),
                   jax.ShapeDtypeStruct((1, 1), jnp.float32)),
        grid_spec=pl.GridSpec(
            grid=grid,
            in_specs=[img_spec, img_spec],
            out_specs=(pl.BlockSpec(memory_space=pltpu.MemorySpace.SMEM),
                       pl.BlockSpec(memory_space=pltpu.MemorySpace.SMEM)),
        ),
        compiler_params=pltpu.CompilerParams(
            dimension_semantics=("arbitrary",)),
    )(src2d, tgt2d)

    mn_s = mn[0, 0]
    mx_s = mx[0, 0]
    # max(stack - min) == max - min exactly (FP subtraction is monotone), so a
    # single scalar divide reproduces the reference denominator.  Constant
    # images (max == min) divide by zero, matching the PyTorch model's own
    # failure mode.
    scale_s = jnp.float32(255.0) / (mx_s - mn_s)
    scalars = jnp.stack([mn_s, scale_s]).astype(jnp.float32)   # (2,) -> SMEM

    # ---- pass 2: normalize + quantize, tiled / pipelined ----
    out3d = pl.pallas_call(
        _normalize_kernel,
        out_shape=jax.ShapeDtypeStruct((2, rows, lane), jnp.uint8),
        grid_spec=pl.GridSpec(
            grid=grid,
            in_specs=[pl.BlockSpec(memory_space=pltpu.MemorySpace.SMEM),
                      img_spec, img_spec],
            out_specs=pl.BlockSpec((2, block_rows, lane),
                                   lambda i: (0, i, 0)),
        ),
        compiler_params=pltpu.CompilerParams(
            dimension_semantics=("parallel",)),
    )(scalars, src2d, tgt2d)

    return out3d.reshape(2, padded)[:, :n].reshape(2, H, W)


# --------------------------------- demo -------------------------------------

if __name__ == "__main__":
    key = jax.random.PRNGKey(0)
    k_src, k_tgt = jax.random.split(key)

    def reference(src_img, tgt_img):
        # Pure-JAX mirror of the PyTorch preprocessing (steps 1-3).
        stack = jnp.stack([jnp.squeeze(src_img), jnp.squeeze(tgt_img)],
                          0).astype(jnp.float32)
        stack = stack - stack.min()
        stack = stack / stack.max()
        return (stack * 255.0).astype(jnp.uint8)

    def check(out, ref):
        assert out.shape == ref.shape and out.dtype == jnp.uint8
        diff = jnp.abs(out.astype(jnp.int32) - ref.astype(jnp.int32))
        # Folding "/range then *255" into one multiply can move values that sit
        # exactly on a quantization boundary by one level; everything else
        # matches the divide-based reference exactly.
        assert int(diff.max()) <= 1
        assert float(jnp.mean(diff == 0)) > 0.99

    # Config A: 128x128 image with small blocks -> exercises the multi-step
    # tiled pipeline (grid of 4 on both passes).
    H = W = 128
    src_a = jax.random.uniform(k_src, (1, 1, H, W), jnp.float32) * 3.0 - 1.0
    tgt_a = jax.random.uniform(k_tgt, (1, 1, H, W), jnp.float32) * 3.0 - 1.0
    out_a = jax.block_until_ready(
        trakem_preprocess(src_a, tgt_a, lane=128, block_rows=32))
    check(out_a, reference(src_a, tgt_a))

    # Config B: 96x96 image with production block sizes -> exercises the
    # padding + single-block path.
    H = W = 96
    src_b = jax.random.uniform(k_src, (1, 1, H, W), jnp.float32) * 2.0
    tgt_b = jax.random.uniform(k_tgt, (1, 1, H, W), jnp.float32) * 2.0
    out_b = jax.block_until_ready(trakem_preprocess(src_b, tgt_b))
    check(out_b, reference(src_b, tgt_b))

    print("KERNEL_OK")
</pallas_src>

<mosaic_0001>
module attributes {stable_mosaic.version = 11 : i64} {
  func.func @_minmax_kernel(%arg0: i32, %arg1: memref<32x128xf32, #tpu.memory_space<vmem>>, %arg2: memref<32x128xf32, #tpu.memory_space<vmem>>, %arg3: memref<1x1xf32, #tpu.memory_space<smem>>, %arg4: memref<1x1xf32, #tpu.memory_space<smem>>) attributes {dimension_semantics = [#tpu.dimension_semantics<arbitrary>], iteration_bounds = array<i64: 4>, scalar_prefetch = 0 : i64, scratch_operands = 0 : i64, tpu.core_type = #tpu.core_type<tc>, window_params = [{transform_indices = @transform_0, window_bounds = array<i64: 32, 128>}, {transform_indices = @transform_1, window_bounds = array<i64: 32, 128>}, {transform_indices = @transform_2, window_bounds = array<i64: 1, 1>}, {transform_indices = @transform_3, window_bounds = array<i64: 1, 1>}]} {
    %c0 = arith.constant 0 : index
    %c0_0 = arith.constant 0 : index
    %0 = vector.load %arg1[%c0, %c0_0] : memref<32x128xf32, #tpu.memory_space<vmem>>, vector<32x128xf32>
    %1 = vector.shape_cast %0 : vector<32x128xf32> to vector<1x32x128xf32>
    %cst = arith.constant dense<0x7F800000> : vector<1xf32>
    %2 = vector.multi_reduction <minimumf>, %1, %cst [1, 2] : vector<1x32x128xf32> to vector<1xf32>
    %3 = vector.shape_cast %2 : vector<1xf32> to vector<1x1x1xf32>
    %4 = vector.extract %3[0, 0, 0] : f32 from vector<1x1x1xf32>
    %c0_1 = arith.constant 0 : index
    %c0_2 = arith.constant 0 : index
    %5 = vector.load %arg2[%c0_1, %c0_2] : memref<32x128xf32, #tpu.memory_space<vmem>>, vector<32x128xf32>
    %6 = vector.shape_cast %5 : vector<32x128xf32> to vector<1x32x128xf32>
    %cst_3 = arith.constant dense<0x7F800000> : vector<1xf32>
    %7 = vector.multi_reduction <minimumf>, %6, %cst_3 [1, 2] : vector<1x32x128xf32> to vector<1xf32>
    %8 = vector.shape_cast %7 : vector<1xf32> to vector<1x1x1xf32>
    %9 = vector.extract %8[0, 0, 0] : f32 from vector<1x1x1xf32>
    %10 = arith.minimumf %4, %9 : f32
    %c0_4 = arith.constant 0 : index
    %c0_5 = arith.constant 0 : index
    %11 = vector.load %arg1[%c0_4, %c0_5] : memref<32x128xf32, #tpu.memory_space<vmem>>, vector<32x128xf32>
    %12 = vector.shape_cast %11 : vector<32x128xf32> to vector<1x32x128xf32>
    %cst_6 = arith.constant dense<0xFF800000> : vector<1xf32>
    %13 = vector.multi_reduction <maximumf>, %12, %cst_6 [1, 2] : vector<1x32x128xf32> to vector<1xf32>
    %14 = vector.shape_cast %13 : vector<1xf32> to vector<1x1x1xf32>
    %15 = vector.extract %14[0, 0, 0] : f32 from vector<1x1x1xf32>
    %c0_7 = arith.constant 0 : index
    %c0_8 = arith.constant 0 : index
    %16 = vector.load %arg2[%c0_7, %c0_8] : memref<32x128xf32, #tpu.memory_space<vmem>>, vector<32x128xf32>
    %17 = vector.shape_cast %16 : vector<32x128xf32> to vector<1x32x128xf32>
    %cst_9 = arith.constant dense<0xFF800000> : vector<1xf32>
    %18 = vector.multi_reduction <maximumf>, %17, %cst_9 [1, 2] : vector<1x32x128xf32> to vector<1xf32>
    %19 = vector.shape_cast %18 : vector<1xf32> to vector<1x1x1xf32>
    %20 = vector.extract %19[0, 0, 0] : f32 from vector<1x1x1xf32>
    %21 = arith.maximumf %15, %20 : f32
    %c0_i32 = arith.constant 0 : i32
    %22 = arith.cmpi eq, %arg0, %c0_i32 : i32
    %23 = arith.extui %22 : i1 to i32
    %c0_i32_10 = arith.constant 0 : i32
    %24 = arith.cmpi ne, %23, %c0_i32_10 : i32
    scf.if %24 {
      %c0_13 = arith.constant 0 : index
      %c0_14 = arith.constant 0 : index
      %28 = memref.load %arg3[%c0_13, %c0_14] : memref<1x1xf32, #tpu.memory_space<smem>>
      memref.store %10, %arg3[%c0_13, %c0_14] : memref<1x1xf32, #tpu.memory_space<smem>>
      %c0_15 = arith.constant 0 : index
      %c0_16 = arith.constant 0 : index
      %29 = memref.load %arg4[%c0_15, %c0_16] : memref<1x1xf32, #tpu.memory_space<smem>>
      memref.store %21, %arg4[%c0_15, %c0_16] : memref<1x1xf32, #tpu.memory_space<smem>>
    } else {
    }
    %c0_i32_11 = arith.constant 0 : i32
    %25 = arith.cmpi ne, %arg0, %c0_i32_11 : i32
    %26 = arith.extui %25 : i1 to i32
    %c0_i32_12 = arith.constant 0 : i32
    %27 = arith.cmpi ne, %26, %c0_i32_12 : i32
    scf.if %27 {
      %c0_13 = arith.constant 0 : index
      %c0_14 = arith.constant 0 : index
      %28 = memref.load %arg3[%c0_13, %c0_14] : memref<1x1xf32, #tpu.memory_space<smem>>
      %29 = arith.minimumf %28, %10 : f32
      %c0_15 = arith.constant 0 : index
      %c0_16 = arith.constant 0 : index
      %30 = memref.load %arg3[%c0_15, %c0_16] : memref<1x1xf32, #tpu.memory_space<smem>>
      memref.store %29, %arg3[%c0_15, %c0_16] : memref<1x1xf32, #tpu.memory_space<smem>>
      %c0_17 = arith.constant 0 : index
      %c0_18 = arith.constant 0 : index
      %31 = memref.load %arg4[%c0_17, %c0_18] : memref<1x1xf32, #tpu.memory_space<smem>>
      %32 = arith.maximumf %31, %21 : f32
      %c0_19 = arith.constant 0 : index
      %c0_20 = arith.constant 0 : index
      %33 = memref.load %arg4[%c0_19, %c0_20] : memref<1x1xf32, #tpu.memory_space<smem>>
      memref.store %32, %arg4[%c0_19, %c0_20] : memref<1x1xf32, #tpu.memory_space<smem>>
    } else {
    }
    return
  }
  func.func @transform_0(%arg0: i32) -> (i32, i32) {
    %c0_i32 = arith.constant 0 : i32
    %c0_i32_0 = arith.constant 0 : i32
    return %arg0, %c0_i32 : i32, i32
  }
  func.func @transform_1(%arg0: i32) -> (i32, i32) {
    %c0_i32 = arith.constant 0 : i32
    %c0_i32_0 = arith.constant 0 : i32
    return %arg0, %c0_i32 : i32, i32
  }
  func.func @transform_2(%arg0: i32) -> (i32, i32) {
    %c0_i32 = arith.constant 0 : i32
    %c0_i32_0 = arith.constant 0 : i32
    %c0_i32_1 = arith.constant 0 : i32
    return %c0_i32, %c0_i32_0 : i32, i32
  }
  func.func @transform_3(%arg0: i32) -> (i32, i32) {
    %c0_i32 = arith.constant 0 : i32
    %c0_i32_0 = arith.constant 0 : i32
    %c0_i32_1 = arith.constant 0 : i32
    return %c0_i32, %c0_i32_0 : i32, i32
  }
}

</mosaic_0001>

<bundles_post_ra>
// kernel: tpu_custom_call.1
= control target key start
LH: loop header
LB: loop body
LE: loop exit
PB: predicated region body
PF: predicated region fallthrough
CT: control target
= control target key end

     0   :  { %9 = vsyncpa [#allocation3], 0  ;;  %s814_s0 = inlined_call_operand.hbm [shape: f32[128,128], index: 0, kind: input, shape index: {}]   ;;  %s815_s1 = inlined_call_operand.hbm [shape: f32[128,128], index: 1, kind: input, shape index: {}]   ;;  %s816_s2 = inlined_call_operand.hbm [shape: f32[1,1], index: 2, kind: output, shape index: {0}]   ;;  %s817_s3 = inlined_call_operand.hbm [shape: f32[1,1], index: 3, kind: output, shape index: {1}]  }
   0x1   :  { %11 = vsyncpa [#allocation3 + $0x1], 0 }
   0x2   :  { %12 = vsyncpa [#allocation6], 0 }
   0x3   :  { %14 = vsyncpa [#allocation6 + $0x1], 0 }
   0x4   :  { %15 = vsyncpa [#allocation4], 0 }
   0x5   :  { %16 = vsyncpa [#allocation9], 0  ;;  %s661_s12 = smov 0   ;;  %s663_s13 = smov 0  }
   0x6   :  { %s665_s14 = smov 0   ;;  %s667_s15 = smov 0  }
   0x7 LB: > { %s680_s16 = sadd.s32 4294967295, %s635_s15   ;;  %s683_s17 = sadd.s32 1, %s635_s15   ;;  %s635_s15 = sphi %s667_s15, %s825_s15   ;;  %s631_s14 = sphi %s665_s14, %s824_s14   ;;  %s627_s13 = sphi %s663_s13, %s823_s13   ;;  %s623_s12 = sphi %s661_s12, %s822_s12  }
   0x8   : > { %s26_s18 = ssub.s32 %s635_s15, %s683_s17  ;;  %s29_s19 = sadd.s32 1, %s631_s14 }
   0x9   : > { %p27_p0 = scmp.eq.s32.totalorder %s26_s18, 0  ;;  %p36_p1 = scmp.ne.s32.totalorder %s631_s14, %s627_s13 }
   0xa   : > { %p37_p2 = scmp.eq.s32.totalorder %s635_s15, 0  ;;  %p42_p3 = scmp.ne.s32.totalorder %s627_s13, %s623_s12 }
   0xb   : > { %s693_s20 = scalar_select %p27_p0, %s631_s14, %s29_s19  }
   0xc   : > { %p695_p4 = por %p37_p2, %p36_p1  ;;  %p43_p5 = scmp.eq.s32.totalorder %s680_s16, 0 }
   0xd   : > { %p458_p6 = scmp.lt.s32.totalorder %s635_s15, 4  ;;  %s708_s23 = sand.u32 1, %s631_s14  }
   0xe   : > { %p703_p7 = por %p43_p5, %p42_p3  ;;  %s406_s24 = sshll.u32 %s708_s23, 5 }
   0xf   : > { %s423_s25 = sshll.u32 %s635_s15, 5  ;;  %s138_s29 = scalar_lea.vmem [#allocation2], %s406_s24 }
  0x10   : > { %s143_s28 = scalar_lea.hbm %s814_s0, %s423_s25  ;;  %s146_s30 = sshll.u32 %s138_s29, 4  ;;  %s147_s30 = int_to_ptr.vmem [resolvable:$true] %s146_s30 }
  0x11   : > { %s144_s4 = sshll.u32 %s143_s28, 4  ;;  %p721_p8 = pnand %p458_p6, %p695_p4  ;;  %s145_s4 = int_to_ptr.hbm [resolvable:$true] %s144_s4 }
  0x12   : > { %p412_p9 = scmp.ge.s32.totalorder %s635_s15, 1  ;;  %s135_s6 = scalar_lea.sflag [#allocation3], %s708_s23 }
  0x13   : > { %s501_s7 = sshra.s32 %s145_s4, 4  ;;  %p505_p11 = pneg %p721_p8  ;;  %s502_s7 = int_to_ptr.hbm [resolvable:$true] %s501_s7 }
  0x14   : > { %s503_s8 = scalar_lea.hbm %s502_s7, 32  ;;  %s508_s11 = scalar_lea.hbm %s814_s0, 128 }
  0x15   : > { %p504_p10 = scmp.ne.s32.totalorder %s502_s7, %s503_s8  ;;  %p509_p0 = scmp.lt.s32.totalorder %s502_s7, %s814_s0 }
  0x16   : > { %p510_p1 = scmp.lt.s32.totalorder %s508_s11, %s503_s8 }
  0x17   : > { %p506_p12 = pnand %p505_p11, %p504_p10 }
  0x18   : > { %p511_p2 = por %p510_p1, %p509_p0 }
  0x19   : > { %p507_p13 = pneg %p506_p12 }
  0x1b   : > { %p512_p3 = pnand %p511_p2, %p507_p13 }
  0x1d   : > { %515 = shalt.err (!%p512_p3)
}
  0x1e   : > { %s637_s19 = smov 128   ;;  %s638_s21 = smov 8  }
  0x1f   : > { %454 = dma.hbm_to_vmem [thread:$0]  (!%p721_p8), %s145_s4, 512, %s147_s30, %s135_s6, %s637_s19, %s637_s19, %s638_s21  }
  0x20   : > { %p176_p4 = scmp.lt.s32.totalorder %s635_s15, 5  ;;  %s165_s28 = scalar_lea.hbm %s815_s1, %s423_s25 }
  0x21   : > { %s166_s7 = sshll.u32 %s165_s28, 4  ;;  %s160_s8 = scalar_lea.vmem [#allocation5], %s406_s24  ;;  %s167_s7 = int_to_ptr.hbm [resolvable:$true] %s166_s7 }
  0x22   : > { %p748_p6 = pnand %p412_p9, %p176_p4  ;;  %s168_s9 = sshll.u32 %s160_s8, 4  ;;  %s169_s9 = int_to_ptr.vmem [resolvable:$true] %s168_s9 }
  0x23   : > { %s157_s10 = scalar_lea.sflag [#allocation6], %s708_s23  ;;  %s531_s11 = sshra.s32 %s167_s7, 4  ;;  %s532_s11 = int_to_ptr.hbm [resolvable:$true] %s531_s11 }
  0x24   : > { %s533_s30 = scalar_lea.hbm %s532_s11, 32  ;;  %s538_s4 = scalar_lea.hbm %s815_s1, 128 }
  0x25   : > { %p534_p10 = scmp.ne.s32.totalorder %s532_s11, %s533_s30  ;;  %p539_p9 = scmp.lt.s32.totalorder %s532_s11, %s815_s1 }
  0x26   : > { %p540_p0 = scmp.lt.s32.totalorder %s538_s4, %s533_s30 }
  0x27   : > { %p536_p12 = pnand %p534_p10, %p505_p11 }
  0x28   : > { %p541_p1 = por %p540_p0, %p539_p9 }
  0x29   : > { %p537_p13 = pneg %p536_p12 }
  0x2b   : > { %p542_p2 = pnand %p541_p1, %p537_p13 }
  0x2d   : > { %545 = shalt.err (!%p542_p2)
}
  0x2e   : > { %457 = dma.hbm_to_vmem [thread:$0]  (!%p721_p8), %s167_s7, 512, %s169_s9, %s157_s10, %s637_s19, %s637_s19, %s638_s21  }
  0x2f   : > { %180 = sbr.rel (%p748_p6) target bundleno = 266 (0x10a), region = 28  ;;  %s182_s23 = sand.u32 (!%p748_p6), 1, %s627_s13  }
  0x30   : > { %s413_s24 = sshll.u32 (!%p748_p6), %s182_s23, 5  ;;  %s183_s18 = scalar_lea.sflag (!%p748_p6), [#allocation3], %s182_s23 }
  0x31   : > { %s186_s26 = scalar_lea.vmem (!%p748_p6), [#allocation2], %s413_s24 }
  0x34   : > { %606 = dma.done.wait (%p703_p7), %s183_s18, 512  }
  0x35   : > { %608 = vsyncadd (%p703_p7), %s183_s18, 4294966784  ;;  %s193_s27 = scalar_lea.sflag [#allocation6], %s182_s23  ;;  %s196_s28 = scalar_lea.vmem [#allocation5], %s413_s24 }
  0x36   : > { %610 = dma.done.wait (%p703_p7), %s193_s27, 512  }
  0x37   : > { %612 = vsyncadd (%p703_p7), %s193_s27, 4294966784  ;;  %v222_v0 = vld [vmem:[%s186_s26] sm:$0xff]  ;;  %v223_v1 = vld [vmem:[%s186_s26 + $0x8] sm:$0xff]  ;;  %s306_s30 = sshll.u32 %s816_s2, 4  ;;  %p415_p7 = scmp.ne.s32.totalorder %s680_s16, 0  ;;  %s307_s30 = int_to_ptr.hbm [resolvable:$true] %s306_s30 }
  0x38   : > { %v224_v2 = vld [vmem:[%s186_s26 + $0x10] sm:$0xff]  ;;  %v225_v3 = vld [vmem:[%s186_s26 + $0x18] sm:$0xff]  ;;  %v255_v4 = vmax.f32 %v222_v0, %v223_v1  ;;  %v226_v5 = vmin.f32 %v222_v0, %v223_v1  ;;  %v238_v8 = vld [vmem:[%s196_s28] sm:$0xff]  ;;  %p461_p8 = scmp.eq.s32.totalorder %s680_s16, 3  ;;  %s316_s4 = sshll.u32 %s817_s3, 4  ;;  %s317_s4 = int_to_ptr.hbm [resolvable:$true] %s316_s4 }
  0x39   : > { %v256_v6 = vmax.f32 %v224_v2, %v225_v3  ;;  %v227_v7 = vmin.f32 %v224_v2, %v225_v3  ;;  %v239_v9 = vld [vmem:[%s196_s28 + $0x8] sm:$0xff]  ;;  %v240_v10 = vld [vmem:[%s196_s28 + $0x10] sm:$0xff]  ;;  %v241_v11 = vld [vmem:[%s196_s28 + $0x18] sm:$0xff]  ;;  %s639_s23 = smov [#allocation7]   ;;  %s640_s24 = smov [#allocation8]  }
  0x3a   : > { %v267_v14 = vmax.f32 %v238_v8, %v239_v9  ;;  %v268_v15 = vmax.f32 %v240_v10, %v241_v11  ;;  %v242_v16 = vmin.f32 %v238_v8, %v239_v9  ;;  %v243_v17 = vmin.f32 %v240_v10, %v241_v11 }
  0x3b   : > { %v257_v12 = vmax.f32 %v255_v4, %v256_v6  ;;  %v228_v13 = vmin.f32 %v226_v5, %v227_v7 }
  0x3c   : > { %v269_v18 = vmax.f32 %v267_v14, %v268_v15  ;;  %v244_v19 = vmin.f32 %v242_v16, %v243_v17 }
  0x3d   : > { %258 = vmax.xlane.f32.xlu1 %v257_v12  ;;  %229 = vmin.xlane.f32.xlu0 %v228_v13 }
  0x45   : > { %270 = vmax.xlane.f32.xlu1 %v269_v18  ;;  %245 = vmin.xlane.f32.xlu0 %v244_v19 }
  0xb0   : > { %v259_v20 = vpop.xlane.xlu1 %258  ;;  %v230_v21 = vpop.xlane.xlu0 %229 }
  0xb1   : > { %v260_v22 = vrot.slane %v259_v20, 4  ;;  %v231_v23 = vrot.slane %v230_v21, 4 }
  0xb3   : > { %v232_v24 = vmin.f32 %v230_v21, %v231_v23  ;;  %v261_v25 = vmax.f32 %v259_v20, %v260_v22 }
  0xb5   : > { %v233_v26 = vrot.slane %v232_v24, 2  ;;  %v262_v28 = vrot.slane %v261_v25, 2 }
  0xb7   : > { %v234_v27 = vmin.f32 %v232_v24, %v233_v26  ;;  %v263_v37 = vmax.f32 %v261_v25, %v262_v28 }
  0xb8   : > { %v271_v29 = vpop.xlane.xlu1 %270  ;;  %v246_v30 = vpop.xlane.xlu0 %245 }
  0xb9   : > { %v272_v31 = vrot.slane %v271_v29, 4  ;;  %v247_v32 = vrot.slane %v246_v30, 4  ;;  %v235_v33 = vrot.slane %v234_v27, 1  ;;  %v264_v42 = vrot.slane %v263_v37, 1 }
  0xbb   : > { %v273_v34 = vmax.f32 %v271_v29, %v272_v31  ;;  %v248_v35 = vmin.f32 %v246_v30, %v247_v32  ;;  %v236_v36 = vmin.f32 %v234_v27, %v235_v33  ;;  %v265_v47 = vmax.f32 %v263_v37, %v264_v42 }
  0xbd   : > { %v274_v38 = vrot.slane %v273_v34, 2  ;;  %v249_v39 = vrot.slane %v248_v35, 2  ;;  %425 = vpush %v236_v36 }
  0xbf   : > { %v275_v40 = vmax.f32 %v273_v34, %v274_v38  ;;  %v250_v41 = vmin.f32 %v248_v35, %v249_v39 }
  0xc1   : > { %v251_v43 = vrot.slane %v250_v41, 1  ;;  %v276_v44 = vrot.slane %v275_v40, 1 }
  0xc3   : > { %v252_v45 = vmin.f32 %v250_v41, %v251_v43  ;;  %v277_v46 = vmax.f32 %v275_v40, %v276_v44 }
  0xc5   : > { %427 = vpush %v252_v45 }
  0xc6   : > { %429 = vpush %v265_v47 }
  0xc7   : > { %431 = vpush %v277_v46 }
  0xee   : > { %s426_s22 = spop %425 }
  0xf6   : > { %s428_s5 = spop %427 }
  0xf7   : > { %s254_s19 = smin.f32 %s428_s5, %s426_s22  ;;  %s430_s21 = spop %429 }
  0xf8   : > { %438 = sst [smem:[#allocation7]] (%p43_p5), %s254_s19  ;;  %s432_s29 = spop %431 }
  0xf9   : > { %s292_s7 = sld [smem:[#allocation7]]  ;;  %s279_s8 = smax.f32 %s432_s29, %s430_s21 }
  0xfa   : > { %439 = sst [smem:[#allocation8]] (%p43_p5), %s279_s8 }
  0xfb   : > { %s296_s9 = sld [smem:[#allocation8]] }
  0xff   : > { %s293_s6 = smin.f32 %s292_s7, %s254_s19 }
 0x100   : > { %441 = sst [smem:[#allocation7]] (%p415_p7), %s293_s6 }
 0x101   : > { %s297_s12 = smax.f32 %s296_s9, %s279_s8 }
 0x102   : > { %444 = dma.smem_to_hbm (%p461_p8), %s639_s23, 16, %s307_s30, [#allocation4]  }
 0x103   : > { %442 = sst [smem:[#allocation8]] (%p415_p7), %s297_s12 }
 0x104   : > { %446 = dma.smem_to_hbm (%p461_p8), %s640_s24, 16, %s317_s4, [#allocation9]  }
 0x105   : > { %614 = dma.done.wait (%p461_p8), [#allocation4], 16  }
 0x106   : > { %616 = vsyncadd (%p461_p8), [#allocation4], 4294967280 }
 0x107   : > { %618 = dma.done.wait (%p461_p8), [#allocation9], 16  }
 0x108   : > { %620 = vsyncadd (%p461_p8), [#allocation9], 4294967280 }
 0x109   : > { %330 = sfence }
 0x10a PF: > { %p19_p5 = scmp.ge.s32.totalorder %s683_s17, 6   ;;  %s822_s12 = smov %s627_s13 }
 0x10b   : > { %s823_s13 = smov %s631_s14  ;;  %s824_s14 = smov %s693_s20 }
 0x10c   : > { %s825_s15 = smov %s683_s17  ;;  %21 = sbr.rel (!%p19_p5) target bundleno = 7 (0x7), region = 98 }
 0x111   :  { %336 = vsyncpa [#allocation3], 1 }
 0x112   :  { %338 = vsyncpa [#allocation3 + $0x1], 1 }
 0x113   :  { %339 = vsyncpa [#allocation6], 1 }
 0x114   :  { %341 = vsyncpa [#allocation6 + $0x1], 1 }
 0x115   :  { %342 = vsyncpa [#allocation4], 1 }
 0x116   :  { %344 = vsyncpa [#allocation4 + $0x1], 1 }
 0x117   :  { %345 = vsyncpa [#allocation9], 1 }

</bundles_post_ra>
